<compile_context>
chip_gen: v5e
topology: v5e:2x2
jax: 0.10.0
libtpu: 0.0.40
codegen_flags: <defaults>
</compile_context>

<pallas_src>
import random

import jax
import jax.numpy as jnp
from jax import lax
from jax.experimental import pallas as pl
from jax.experimental.pallas import tpu as pltpu

_EPS = 1e-5

# ---------------------------------------------------------------------------
# Chip-aware budgets (cached; safe fallback if the query is unavailable).
# ---------------------------------------------------------------------------
_CHIP_CONFIG = None


def _chip_config():
    global _CHIP_CONFIG
    if _CHIP_CONFIG is None:
        vmem_phys = 128 << 20
        try:
            info = pltpu.get_tpu_info()
            vmem_phys = int(getattr(info, "vmem_capacity_bytes", vmem_phys) or vmem_phys)
        except Exception:
            pass
        if vmem_phys <= (64 << 20):
            # v7x-class: 64 MiB per TensorCore -> keep double-buffered blocks small.
            _CHIP_CONFIG = {"block_budget": 10 << 20, "vmem_cap": 52 << 20}
        else:
            # v5e / v6e: 128 MiB physical VMEM.
            _CHIP_CONFIG = {"block_budget": 16 << 20, "vmem_cap": 96 << 20}
    return _CHIP_CONFIG


# ---------------------------------------------------------------------------
# Tiling helpers (static Python arithmetic only).
# ---------------------------------------------------------------------------
def _largest_divisor_at_most(n, cap):
    cap = max(1, min(n, cap))
    while n % cap:
        cap -= 1
    return cap


def _pick_tiles(batch, c, hw, itemsize, budget):
    """Choose (bt, thw) with bt*C*thw*itemsize <= budget and thw lane-aligned."""
    sample_bytes = c * hw * itemsize
    if sample_bytes <= budget:
        thw = hw                                  # full HW (equals array dim)
        bt_cap = max(1, budget // sample_bytes)
    else:
        thw = (budget // max(c * itemsize, 1)) // 128 * 128
        thw = min(max(128, thw), hw)              # multiple of 128, or full HW
        bt_cap = 1
    # Keep the leading "parallel" batch axis at >= 2 grid steps so both of
    # v7x's TensorCores get work (one extra ~0.35us step on single-TC chips).
    bt_cap = min(bt_cap, max(1, batch // 2))
    bt = _largest_divisor_at_most(batch, bt_cap)  # avoid ragged batch blocks
    return bt, thw


def _vmem_limit_bytes(block_bytes_list, cap):
    needed = 2 * sum(block_bytes_list) + (6 << 20)   # double-buffered blocks + headroom
    if needed > cap:
        raise ValueError(
            f"CrossNorm tiling needs ~{needed} bytes of VMEM but the chip cap is {cap}."
        )
    return int(min(max(needed, 32 << 20), cap))


# ---------------------------------------------------------------------------
# Pass 1: per-sample, per-channel mean / unbiased variance (torch.var ddof=1).
# HW may be a streaming reduction axis (last grid axis, "arbitrary").
# ---------------------------------------------------------------------------
def _make_stats_kernel(hw, thw, nh):
    inv_n = 1.0 / hw
    inv_nm1 = 1.0 / max(hw - 1, 1)   # HW==1 guard (torch yields NaN; we emit var=0)

    def kernel(x_ref, mean_ref, var_ref, sum_ref, sq_ref):
        if nh == 1:
            # Whole sample in one block: accurate two-pass mean / centered var.
            x = x_ref[...].astype(jnp.float32)                  # (bt, C, HW)
            mean = jnp.mean(x, axis=-1)                         # (bt, C)
            xc = x - mean[:, :, None]
            var = jnp.sum(xc * xc, axis=-1) * inv_nm1
            mean_ref[...] = mean[:, None, :]
            var_ref[...] = var[:, None, :]
        else:
            # Streaming sum / sum-of-squares over HW tiles; ragged edge masked.
            h = pl.program_id(1)

            @pl.when(h == 0)
            def _():
                sum_ref[...] = jnp.zeros_like(sum_ref)
                sq_ref[...] = jnp.zeros_like(sq_ref)

            x = x_ref[...].astype(jnp.float32)                  # (bt, C, thw)
            lane = lax.broadcasted_iota(jnp.int32, x.shape, 2)
            x = jnp.where(lane < (hw - h * thw), x, 0.0)
            sum_ref[...] = sum_ref[...] + jnp.sum(x, axis=-1)
            sq_ref[...] = sq_ref[...] + jnp.sum(x * x, axis=-1)

            @pl.when(h == nh - 1)
            def _():
                mean = sum_ref[...] * inv_n                     # (bt, C)
                # TODO(synk): single-pass E[x^2]-mean^2 can lose precision vs the
                # two-pass reference for large-mean data on the HW-tiled path.
                var = jnp.maximum(sq_ref[...] - hw * (mean * mean), 0.0) * inv_nm1
                mean_ref[...] = mean[:, None, :]
                var_ref[...] = var[:, None, :]

    return kernel


def _stats_pallas(x_flat, bt, thw, vmem_cap):
    B, C, HW = x_flat.shape
    nb = B // bt
    nh = pl.cdiv(HW, thw)
    in_bytes = bt * C * thw * x_flat.dtype.itemsize
    stat_bytes = bt * C * 4
    return pl.pallas_call(
        _make_stats_kernel(HW, thw, nh),
        out_shape=(
            jax.ShapeDtypeStruct((B, 1, C), jnp.float32),
            jax.ShapeDtypeStruct((B, 1, C), jnp.float32),
        ),
        grid_spec=pltpu.PrefetchScalarGridSpec(
            num_scalar_prefetch=0,
            grid=(nb, nh),
            in_specs=[pl.BlockSpec((bt, C, thw), lambda b, h: (b, 0, h))],
            out_specs=[
                pl.BlockSpec((bt, 1, C), lambda b, h: (b, 0, 0)),
                pl.BlockSpec((bt, 1, C), lambda b, h: (b, 0, 0)),
            ],
            scratch_shapes=[
                pltpu.VMEM((bt, C), jnp.float32),
                pltpu.VMEM((bt, C), jnp.float32),
            ],
        ),
        compiler_params=pltpu.CompilerParams(
            dimension_semantics=("parallel", "arbitrary"),
            vmem_limit_bytes=_vmem_limit_bytes(
                [in_bytes, stat_bytes, stat_bytes], vmem_cap
            ),
        ),
    )(x_flat)


# ---------------------------------------------------------------------------
# Pass 2: pure elementwise FMA with per-channel scalars:  o = x * scale + shift
# ---------------------------------------------------------------------------
def _apply_kernel(x_ref, scale_ref, shift_ref, o_ref):
    o_ref[...] = (x_ref[...] * scale_ref[...] + shift_ref[...]).astype(o_ref.dtype)


def _apply_pallas(x_flat, scale, shift, bt, thw, vmem_cap):
    B, C, HW = x_flat.shape
    nh = pl.cdiv(HW, thw)
    blk_bytes = bt * C * thw * x_flat.dtype.itemsize
    scale_bytes = bt * C * scale.dtype.itemsize
    shift_bytes = bt * C * shift.dtype.itemsize
    return pl.pallas_call(
        _apply_kernel,
        out_shape=jax.ShapeDtypeStruct((B, C, HW), x_flat.dtype),
        grid_spec=pltpu.PrefetchScalarGridSpec(
            num_scalar_prefetch=0,
            grid=(B // bt, nh),
            in_specs=[
                pl.BlockSpec((bt, C, thw), lambda b, h: (b, 0, h)),
                pl.BlockSpec((bt, C, 1), lambda b, h: (b, 0, 0)),
                pl.BlockSpec((bt, C, 1), lambda b, h: (b, 0, 0)),
            ],
            out_specs=pl.BlockSpec((bt, C, thw), lambda b, h: (b, 0, h)),
        ),
        compiler_params=pltpu.CompilerParams(
            dimension_semantics=("parallel", "parallel"),
            vmem_limit_bytes=_vmem_limit_bytes(
                [blk_bytes, scale_bytes, shift_bytes, blk_bytes], vmem_cap
            ),
        ),
    )(x_flat, scale, shift)


# ---------------------------------------------------------------------------
# Fused two-pass CrossNorm on flattened [B, C, HW] input.
# ---------------------------------------------------------------------------
@jax.jit
def _crossnorm_pallas(x_flat, indices):
    """x_flat: [B, C, HW]; indices: [B] int32 permutation."""
    B, C, HW = x_flat.shape
    itemsize = x_flat.dtype.itemsize
    cfg = _chip_config()
    budget, vmem_cap = cfg["block_budget"], cfg["vmem_cap"]
    bt, thw = _pick_tiles(B, C, HW, itemsize, budget)

    # Pass 1: per-sample stats (lane-dense (B, 1, C) f32 outputs).
    mean, var = _stats_pallas(x_flat, bt, thw, vmem_cap)

    # Fold gather + normalization + re-styling into a per-channel affine.
    # TODO(synk): this tiny epilogue could be fused into the apply kernel via
    # scalar-prefetched indices, but that would force bt == 1 on the batch axis.
    std = jnp.sqrt(var + _EPS)
    mean_swap = jnp.take(mean, indices, axis=0)
    std_swap = jnp.take(std, indices, axis=0)
    scale = std_swap / std                                # (B, 1, C) f32
    shift = mean_swap - mean * scale                      # (B, 1, C) f32
    scale = jnp.swapaxes(scale, 1, 2)                     # (B, C, 1)
    shift = jnp.swapaxes(shift, 1, 2)
    if x_flat.dtype == jnp.bfloat16:
        scale = scale.astype(jnp.bfloat16)                # keep shift in f32

    # Pass 2: elementwise FMA, tiled over batch and HW (cdiv grid on HW).
    return _apply_pallas(x_flat, scale, shift, bt, thw, vmem_cap)


# ---------------------------------------------------------------------------
# Module-level forward (mirrors CrossNorm.forward semantics)
# ---------------------------------------------------------------------------
def cross_norm(x, *, p=0.5, training=True, indices=None, key=None, gate=None):
    """CrossNorm forward. x: [B, C, H, W]."""
    B, C, H, W = x.shape
    if (not training) or (B < 2):
        return x

    # Stochastic gate on the host (like torch.rand(1).item()); host RNG avoids a
    # device->host sync.  In multi-replica training, pass an explicit `gate`.
    if gate is None:
        gate = random.random()
    if gate > p:
        return x

    if indices is None:
        if key is None:
            key = jax.random.PRNGKey(random.getrandbits(31))
        indices = jax.random.permutation(key, B)
    indices = jnp.asarray(indices, dtype=jnp.int32)

    _chip_config()  # warm the cached hardware query outside of jit tracing
    x_flat = x.reshape(B, C, H * W)
    out_flat = _crossnorm_pallas(x_flat, indices)
    return out_flat.reshape(B, C, H, W)


def _cross_norm_reference(x, indices):
    """Pure-JAX reference of the PyTorch math (given a fixed permutation)."""
    xf = x.astype(jnp.float32)
    mean = jnp.mean(xf, axis=(2, 3), keepdims=True)
    var = jnp.var(xf, axis=(2, 3), keepdims=True, ddof=1)   # unbiased, like torch.var
    std = jnp.sqrt(var + _EPS)
    mean_swap = mean[indices]
    std_swap = std[indices]
    x_norm = (xf - mean) / std
    return (x_norm * std_swap + mean_swap).astype(x.dtype)


if __name__ == "__main__":
    key = jax.random.PRNGKey(0)
    k_x, k_perm = jax.random.split(key)

    B, C, H, W = 2, 4, 16, 16
    x = jax.random.normal(k_x, (B, C, H, W), dtype=jnp.float32)

    # Fixed permutation so kernel and reference see the same swap partners;
    # p=1.0 forces the "apply" branch of the stochastic gate.
    indices = jax.random.permutation(k_perm, B).astype(jnp.int32)

    out = cross_norm(x, p=1.0, training=True, indices=indices)
    out = jax.block_until_ready(out)

    ref = _cross_norm_reference(x, indices)
    assert out.shape == x.shape and out.dtype == x.dtype
    assert jnp.allclose(out, ref, atol=1e-4, rtol=1e-4), "mismatch vs reference"

    print("KERNEL_OK")
</pallas_src>

<mosaic_0001>
module attributes {stable_mosaic.version = 11 : i64} {
  func.func @kernel(%arg0: i32, %arg1: i32, %arg2: memref<1x4x256xf32, #tpu.memory_space<vmem>>, %arg3: memref<1x1x4xf32, #tpu.memory_space<vmem>>, %arg4: memref<1x1x4xf32, #tpu.memory_space<vmem>>, %arg5: memref<1x4xf32, #tpu.memory_space<vmem>>, %arg6: memref<1x4xf32, #tpu.memory_space<vmem>>) attributes {dimension_semantics = [#tpu.dimension_semantics<parallel>, #tpu.dimension_semantics<arbitrary>], iteration_bounds = array<i64: 2, 1>, scalar_prefetch = 0 : i64, scratch_operands = 2 : i64, tpu.core_type = #tpu.core_type<tc>, window_params = [{transform_indices = @transform_0, window_bounds = array<i64: 1, 4, 256>}, {transform_indices = @transform_1, window_bounds = array<i64: 1, 1, 4>}, {transform_indices = @transform_2, window_bounds = array<i64: 1, 1, 4>}]} {
    %c0 = arith.constant 0 : index
    %c0_0 = arith.constant 0 : index
    %c0_1 = arith.constant 0 : index
    %0 = vector.load %arg2[%c0, %c0_0, %c0_1] : memref<1x4x256xf32, #tpu.memory_space<vmem>>, vector<1x4x256xf32>
    %cst = arith.constant dense<0.000000e+00> : vector<1x4xf32>
    %1 = vector.multi_reduction <add>, %0, %cst [2] : vector<1x4x256xf32> to vector<1x4xf32>
    %cst_2 = arith.constant 2.560000e+02 : f32
    %2 = vector.broadcast %cst_2 : f32 to vector<1x4xf32>
    %3 = arith.divf %1, %2 : vector<1x4xf32>
    %4 = vector.shape_cast %3 : vector<1x4xf32> to vector<1x4x1xf32>
    %5 = vector.broadcast %4 : vector<1x4x1xf32> to vector<1x4x256xf32>
    %6 = arith.subf %0, %5 : vector<1x4x256xf32>
    %7 = arith.mulf %6, %6 : vector<1x4x256xf32>
    %cst_3 = arith.constant dense<0.000000e+00> : vector<1x4xf32>
    %8 = vector.multi_reduction <add>, %7, %cst_3 [2] : vector<1x4x256xf32> to vector<1x4xf32>
    %cst_4 = arith.constant 0.00392156886 : f32
    %9 = vector.broadcast %cst_4 : f32 to vector<1x4xf32>
    %10 = arith.mulf %8, %9 : vector<1x4xf32>
    %11 = vector.shape_cast %3 : vector<1x4xf32> to vector<1x1x4xf32>
    %c0_5 = arith.constant 0 : index
    %c0_6 = arith.constant 0 : index
    %c0_7 = arith.constant 0 : index
    %12 = vector.load %arg3[%c0_5, %c0_6, %c0_7] : memref<1x1x4xf32, #tpu.memory_space<vmem>>, vector<1x1x4xf32>
    tpu.vector_store %arg3[%c0_5, %c0_6, %c0_7], %11 {strides = array<i32>} : memref<1x1x4xf32, #tpu.memory_space<vmem>>, vector<1x1x4xf32>,
    %13 = vector.shape_cast %10 : vector<1x4xf32> to vector<1x1x4xf32>
    %c0_8 = arith.constant 0 : index
    %c0_9 = arith.constant 0 : index
    %c0_10 = arith.constant 0 : index
    %14 = vector.load %arg4[%c0_8, %c0_9, %c0_10] : memref<1x1x4xf32, #tpu.memory_space<vmem>>, vector<1x1x4xf32>
    tpu.vector_store %arg4[%c0_8, %c0_9, %c0_10], %13 {strides = array<i32>} : memref<1x1x4xf32, #tpu.memory_space<vmem>>, vector<1x1x4xf32>,
    return
  }
  func.func @transform_0(%arg0: i32, %arg1: i32) -> (i32, i32, i32) {
    %c0_i32 = arith.constant 0 : i32
    %c0_i32_0 = arith.constant 0 : i32
    return %arg0, %c0_i32, %arg1 : i32, i32, i32
  }
  func.func @transform_1(%arg0: i32, %arg1: i32) -> (i32, i32, i32) {
    %c0_i32 = arith.constant 0 : i32
    %c0_i32_0 = arith.constant 0 : i32
    %c0_i32_1 = arith.constant 0 : i32
    return %arg0, %c0_i32, %c0_i32_0 : i32, i32, i32
  }
  func.func @transform_2(%arg0: i32, %arg1: i32) -> (i32, i32, i32) {
    %c0_i32 = arith.constant 0 : i32
    %c0_i32_0 = arith.constant 0 : i32
    %c0_i32_1 = arith.constant 0 : i32
    return %arg0, %c0_i32, %c0_i32_0 : i32, i32, i32
  }
}

module attributes {stable_mosaic.version = 11 : i64} {
  func.func @_apply_kernel(%arg0: i32, %arg1: i32, %arg2: memref<1x4x256xf32, #tpu.memory_space<vmem>>, %arg3: memref<1x4x1xf32, #tpu.memory_space<vmem>>, %arg4: memref<1x4x1xf32, #tpu.memory_space<vmem>>, %arg5: memref<1x4x256xf32, #tpu.memory_space<vmem>>) attributes {dimension_semantics = [#tpu.dimension_semantics<parallel>, #tpu.dimension_semantics<parallel>], iteration_bounds = array<i64: 2, 1>, scalar_prefetch = 0 : i64, scratch_operands = 0 : i64, tpu.core_type = #tpu.core_type<tc>, window_params = [{transform_indices = @transform_0, window_bounds = array<i64: 1, 4, 256>}, {transform_indices = @transform_1, window_bounds = array<i64: 1, 4, 1>}, {transform_indices = @transform_2, window_bounds = array<i64: 1, 4, 1>}, {transform_indices = @transform_3, window_bounds = array<i64: 1, 4, 256>}]} {
    %c0 = arith.constant 0 : index
    %c0_0 = arith.constant 0 : index
    %c0_1 = arith.constant 0 : index
    %0 = vector.load %arg2[%c0, %c0_0, %c0_1] : memref<1x4x256xf32, #tpu.memory_space<vmem>>, vector<1x4x256xf32>
    %c0_2 = arith.constant 0 : index
    %c0_3 = arith.constant 0 : index
    %c0_4 = arith.constant 0 : index
    %1 = vector.load %arg3[%c0_2, %c0_3, %c0_4] : memref<1x4x1xf32, #tpu.memory_space<vmem>>, vector<1x4x1xf32>
    %2 = vector.broadcast %1 : vector<1x4x1xf32> to vector<1x4x256xf32>
    %3 = arith.mulf %0, %2 : vector<1x4x256xf32>
    %c0_5 = arith.constant 0 : index
    %c0_6 = arith.constant 0 : index
    %c0_7 = arith.constant 0 : index
    %4 = vector.load %arg4[%c0_5, %c0_6, %c0_7] : memref<1x4x1xf32, #tpu.memory_space<vmem>>, vector<1x4x1xf32>
    %5 = vector.broadcast %4 : vector<1x4x1xf32> to vector<1x4x256xf32>
    %6 = arith.addf %3, %5 : vector<1x4x256xf32>
    %c0_8 = arith.constant 0 : index
    %c0_9 = arith.constant 0 : index
    %c0_10 = arith.constant 0 : index
    %7 = vector.load %arg5[%c0_8, %c0_9, %c0_10] : memref<1x4x256xf32, #tpu.memory_space<vmem>>, vector<1x4x256xf32>
    tpu.vector_store %arg5[%c0_8, %c0_9, %c0_10], %6 {strides = array<i32>} : memref<1x4x256xf32, #tpu.memory_space<vmem>>, vector<1x4x256xf32>,
    return
  }
  func.func @transform_0(%arg0: i32, %arg1: i32) -> (i32, i32, i32) {
    %c0_i32 = arith.constant 0 : i32
    %c0_i32_0 = arith.constant 0 : i32
    return %arg0, %c0_i32, %arg1 : i32, i32, i32
  }
  func.func @transform_1(%arg0: i32, %arg1: i32) -> (i32, i32, i32) {
    %c0_i32 = arith.constant 0 : i32
    %c0_i32_0 = arith.constant 0 : i32
    %c0_i32_1 = arith.constant 0 : i32
    return %arg0, %c0_i32, %c0_i32_0 : i32, i32, i32
  }
  func.func @transform_2(%arg0: i32, %arg1: i32) -> (i32, i32, i32) {
    %c0_i32 = arith.constant 0 : i32
    %c0_i32_0 = arith.constant 0 : i32
    %c0_i32_1 = arith.constant 0 : i32
    return %arg0, %c0_i32, %c0_i32_0 : i32, i32, i32
  }
  func.func @transform_3(%arg0: i32, %arg1: i32) -> (i32, i32, i32) {
    %c0_i32 = arith.constant 0 : i32
    %c0_i32_0 = arith.constant 0 : i32
    return %arg0, %c0_i32, %arg1 : i32, i32, i32
  }
}

</mosaic_0001>

<bundles_post_ra>
// kernel: _crossnorm_pallas.2
= control target key start
LH: loop header
LB: loop body
LE: loop exit
PB: predicated region body
PF: predicated region fallthrough
CT: control target
= control target key end

     0   :  { %8 = vsyncpa [#allocation5], 0  ;;  %s596_s0 = inlined_call_operand.hbm [shape: f32[2,4,256], index: 0, kind: input, shape index: {}]   ;;  %s597_s1 = inlined_call_operand.vmem [shape: f32[2,1,4], index: 1, kind: output, shape index: {0}]   ;;  %s598_s2 = inlined_call_operand.vmem [shape: f32[2,1,4], index: 2, kind: output, shape index: {1}]  }
   0x1   :  { %10 = vsyncpa [#allocation5 + $0x1], 0  ;;  %s499_s9 = smov 0   ;;  %s501_s10 = smov 0  }
   0x2   :  { %s503_s11 = smov 0   ;;  %s505_s12 = smov 0  }
   0x3   :  { %s507_s13 = smov 0   ;;  %s509_s14 = smov 0  }
   0x4 LB: > { %s329_s15 = sadd.s32 4294967295, %s480_s14   ;;  %s28_s16 = sadd.s32 1, %s476_s13  ;;  %s480_s14 = sphi %s509_s14, %s16_s14   ;;  %s476_s13 = sphi %s507_s13, %s605_s13   ;;  %s472_s12 = sphi %s505_s12, %s604_s12   ;;  %s468_s11 = sphi %s503_s11, %s603_s11   ;;  %s464_s10 = sphi %s501_s10, %s602_s10   ;;  %s460_s9 = sphi %s499_s9, %s601_s9  }
   0x5   : > { %p30_p0 = scmp.ge.s32.totalorder %s28_s16, 2  ;;  %s37_s17 = sadd.s32 1, %s468_s11 }
   0x6   : > { %p44_p1 = scmp.ne.s32.totalorder %s468_s11, %s464_s10  ;;  %p45_p2 = scmp.eq.s32.totalorder %s480_s14, 0 }
   0x7   : > { %s607_s16 = smov (%p30_p0, %s28_s16), 0  ;;  %p50_p4 = scmp.ne.s32.totalorder %s464_s10, %s460_s9 }
   0x8   : > { %p535_p3 = por %p45_p2, %p44_p1  ;;  %s32_s19 = ssub.s32 %s476_s13, %s607_s16 }
   0x9   : > { %p51_p5 = scmp.eq.s32.totalorder %s329_s15, 0  ;;  %p35_p6 = scmp.eq.s32.totalorder %s32_s19, 0 }
   0xa   : > { %p347_p8 = scmp.lt.s32.totalorder %s480_s14, 2  ;;  %s126_s22 = sand.u32 1, %s468_s11  }
   0xb   : > { %p542_p7 = por %p51_p5, %p50_p4  ;;  %s340_s23 = sshll.u32 %s476_s13, 3 }
   0xc   : > { %s548_s21 = scalar_select %p35_p6, %s468_s11, %s37_s17  }
   0xd   : > { %s333_s24 = sshll.u32 %s126_s22, 3  ;;  %s137_s27 = scalar_lea.hbm %s596_s0, %s340_s23 }
   0xe   : > { %s139_s28 = sshll.u32 %s137_s27, 4  ;;  %s130_s29 = scalar_lea.vmem [#allocation4], %s333_s24  ;;  %s140_s28 = int_to_ptr.hbm [resolvable:$true] %s139_s28 }
   0xf   : > { %s141_s30 = sshll.u32 %s130_s29, 4  ;;  %p344_p9 = pnand %p347_p8, %p535_p3  ;;  %s142_s30 = int_to_ptr.vmem [resolvable:$true] %s141_s30 }
  0x10   : > { %p336_p10 = scmp.ge.s32.totalorder %s480_s14, 1  ;;  %p146_p11 = scmp.lt.s32.totalorder %s480_s14, 3 }
  0x11   : > { %s127_s3 = scalar_lea.sflag [#allocation5], %s126_s22 }
  0x12   : > { %346 = dma.hbm_to_vmem [thread:$0]  (!%p344_p9), %s140_s28, 128, %s142_s30, %s127_s3  }
  0x13   : > { %p147_p12 = pnand %p336_p10, %p146_p11 }
  0x14   : > { %s152_s4 = sand.u32 (!%p147_p12), 1, %s464_s10  }
  0x15   : > { %150 = sbr.rel (%p147_p12) target bundleno = 295 (0x127), region = 24  ;;  %s337_s5 = sshll.u32 (!%p147_p12), %s152_s4, 3 }
  0x16   : > { %s153_s6 = scalar_lea.sflag (!%p147_p12), [#allocation5], %s152_s4  ;;  %s156_s7 = scalar_lea.vmem (!%p147_p12), [#allocation4], %s337_s5 }
  0x1a   : > { %455 = dma.done.wait (%p542_p7), %s153_s6, 128  }
  0x1b   : > { %457 = vsyncadd (%p542_p7), %s153_s6, 4294967168  ;;  %v186_v0 = vld [vmem:[%s156_s7] sm:$0xff]  ;;  %vm193_vm0 = vcmask 1043456   ;;  %v482_v6 = vmov 256.0   ;;  %p180_p13 = scmp.lt.s32.totalorder %s472_s12, 1  ;;  %v227_v14 = vlaneseq  ;;  %vm231_vm2 = vcmask 24576  }
  0x1c   : > { %188 = vst [vmem:[#allocation1] ss:$2 sm:$0xff] %v186_v0  ;;  %398 = vrcp.f32 %v482_v6  ;;  %v483_v12 = vmov 839922192  }
  0x1d   : > { %v209_v13 = vunpack.c.l.s4 %v483_v12  ;;  %s609_s12 = smov (!%p180_p13, %s472_s12), 1  ;;  %v228_v17 = vand.u32 127, %v227_v14 }
  0x1e   : > { %s182_s15 = scalar_lea.vmem %s597_s1, %s609_s12  ;;  %s185_s19 = scalar_lea.vmem %s598_s2, %s609_s12 }
  0x1f   : > { %v210_v16 = vunpack.c.0.s8 %v209_v13 }
  0x22   : > { %v399_v7 = vpop.eup %398 }
  0x23   : > { %v189_v1 = vld.sshfl [vmem:[#allocation1] sm:$0xff pattern:$0x75316420]  ;;  %v190_v2 = vld.sshfl [vmem:[#allocation1 + $0x8] sm:$0xff pattern:$0x75316420]  ;;  %vm204_vm1 = vweird.f32 %v399_v7 }
  0x24   : > { %v194_v3 = vsel %vm193_vm0, %v189_v1, 0.0  ;;  %v195_v4 = vsel %vm193_vm0, %v190_v2, 0.0  ;;  %v200_v8 = vmul.f32 256.0, %v399_v7 }
  0x25   : > { %v196_v5 = vadd.f32 %v195_v4, %v194_v3 }
  0x26   : > { %v201_v9 = vsub.f32 1.0, %v200_v8 }
  0x27   : > { %197 = vadd.xlane.f32.xlu0 %v196_v5 }
  0x28   : > { %v202_v10 = vmul.f32 %v399_v7, %v201_v9 }
  0x2a   : > { %v203_v11 = vadd.f32 %v399_v7, %v202_v10 }
  0x2c   : > { %v205_v15 = vsel %vm204_vm1, %v399_v7, %v203_v11 }
  0x9a   : > { %v198_v18 = vpop.xlane.xlu0 %197 }
  0x9b   : > { %v206_v19 = vmul.f32 %v205_v15, %v198_v18 }
  0x9d   : > { %v211_v20 = vperm.slane %v206_v19, %v210_v16  ;;  %v229_v21 = vperm.slane %v206_v19, %v228_v17 }
  0x9f   : > { %v213_v22 = vsub.f32 %v186_v0, %v211_v20  ;;  %232 = vst.msk [vmem:[%s182_s15] sm:$0x1] %vm231_vm2, %v229_v21 }
  0xa1   : > { %v214_v23 = vmul.f32 %v213_v22, %v213_v22 }
  0xa3   : > { %216 = vst [vmem:[#allocation1] ss:$2 sm:$0xff] %v214_v23 }
  0xaa   : > { %v217_v24 = vld.sshfl [vmem:[#allocation1] sm:$0xff pattern:$0x75316420]  ;;  %v218_v25 = vld.sshfl [vmem:[#allocation1 + $0x8] sm:$0xff pattern:$0x75316420] }
  0xab   : > { %v221_v26 = vsel %vm193_vm0, %v217_v24, 0.0  ;;  %v222_v27 = vsel %vm193_vm0, %v218_v25, 0.0 }
  0xac   : > { %v223_v28 = vadd.f32 %v222_v27, %v221_v26 }
  0xae   : > { %224 = vadd.xlane.f32.xlu0 %v223_v28 }
 0x121   : > { %v225_v29 = vpop.xlane.xlu0 %224 }
 0x122   : > { %v226_v30 = vmul.f32 0.003921569, %v225_v29 }
 0x124   : > { %v234_v31 = vperm.slane %v226_v30, %v228_v17 }
 0x126   : > { %236 = vst.msk [vmem:[%s185_s19] sm:$0x1] %vm231_vm2, %v234_v31 }
 0x127 PF: > { %s16_s14 = sadd.s32 1, %s480_s14   ;;  %s601_s9 = smov %s464_s10 }
 0x128   : > { %p13_p0 = scmp.ge.s32.totalorder %s16_s14, 4   ;;  %s602_s10 = smov %s468_s11 }
 0x129   : > { %s603_s11 = smov %s548_s21  ;;  %s604_s12 = smov %s476_s13 }
 0x12a   : > { %s605_s13 = smov %s607_s16  ;;  %15 = sbr.rel (!%p13_p0) target bundleno = 4 (0x4), region = 76 }
 0x12f   :  { %266 = vsyncpa [#allocation5], 1 }
 0x130   :  { %268 = vsyncpa [#allocation5 + $0x1], 1 }

// kernel: _crossnorm_pallas.3
= control target key start
LH: loop header
LB: loop body
LE: loop exit
PB: predicated region body
PF: predicated region fallthrough
CT: control target
= control target key end

     0   :  { %8 = vsyncpa [#allocation3], 0  ;;  %s657_s0 = inlined_call_operand.vmem [shape: f32[2,4,256], index: 0, kind: input, shape index: {}]   ;;  %s658_s1 = inlined_call_operand.vmem [shape: f32[2,4,1], index: 1, kind: input, shape index: {}]   ;;  %s659_s2 = inlined_call_operand.vmem [shape: f32[2,4,1], index: 2, kind: input, shape index: {}]   ;;  %s660_s3 = inlined_call_operand.hbm [shape: f32[2,4,256], index: 3, kind: output, shape index: {}]  }
   0x1   :  { %10 = vsyncpa [#allocation3 + $0x1], 0  ;;  %s554_s12 = smov 0   ;;  %s556_s13 = smov 0  }
   0x2   :  { %s558_s14 = smov 0   ;;  %s560_s15 = smov 0  }
   0x3   :  { %s562_s16 = smov 0   ;;  %s564_s17 = smov 0  }
   0x4 LB: > { %s377_s18 = sadd.s32 4294967295, %s530_s17   ;;  %s378_s19 = sadd.s32 4294967294, %s530_s17   ;;  %s530_s17 = sphi %s564_s17, %s16_s17   ;;  %s526_s16 = sphi %s562_s16, %s667_s16   ;;  %s522_s15 = sphi %s560_s15, %s666_s15   ;;  %s518_s14 = sphi %s558_s14, %s665_s14   ;;  %s514_s13 = sphi %s556_s13, %s664_s13   ;;  %s510_s12 = sphi %s554_s12, %s663_s12  }
   0x5   : > { %s28_s20 = sadd.s32 1, %s526_s16  ;;  %s117_s21 = sadd.s32 1, %s518_s14 }
   0x6   : > { %p30_p0 = scmp.ge.s32.totalorder %s28_s20, 2  ;;  %p127_p1 = scmp.ne.s32.totalorder %s518_s14, %s514_s13 }
   0x7   : > { %p128_p2 = scmp.eq.s32.totalorder %s377_s18, 1  ;;  %p133_p3 = scmp.ne.s32.totalorder %s514_s13, %s510_s12 }
   0x8   : > { %s669_s20 = smov (%p30_p0, %s28_s20), 0  ;;  %p134_p5 = scmp.eq.s32.totalorder %s378_s19, 1 }
   0x9   : > { %p594_p4 = por %p128_p2, %p127_p1  ;;  %s112_s23 = ssub.s32 %s526_s16, %s669_s20 }
   0xa   : > { %p381_p6 = scmp.ge.s32.totalorder %s530_s17, 1  ;;  %p115_p7 = scmp.eq.s32.totalorder %s112_s23, 0 }
   0xb   : > { %p601_p8 = por %p134_p5, %p133_p3  ;;  %p179_p9 = scmp.lt.s32.totalorder %s530_s17, 3 }
   0xc   : > { %s607_s25 = scalar_select %p115_p7, %s518_s14, %s117_s21  }
   0xd   : > { %p180_p10 = pnand %p381_p6, %p179_p9 }
   0xe   : > { %p216_p11 = scmp.lt.s32.totalorder (!%p180_p10), %s522_s15, 1  ;;  %s212_s7 = sand.u32 (!%p180_p10), 1, %s514_s13  }
   0xf   : > { %183 = sbr.rel (%p180_p10) target bundleno = 155 (0x9b), region = 32  ;;  %s382_s9 = sshll.u32 (!%p180_p10), %s212_s7, 3 }
  0x10   : > { %s393_s10 = sshll.u32 (!%p180_p10), %s522_s15, 3 }
  0x11   : > { %s272_s28 = scalar_lea.hbm (!%p180_p10), %s660_s3, %s393_s10 }
  0x14   : > { %v532_v0 = vmov 0   ;;  %s217_s26 = scalar_select %p216_p11, %s522_s15, 1  ;;  %v533_v3 = vmov 839922192  }
  0x15   : > { %451 = vset.pattern.permute.xlu0 %v532_v0  ;;  %v241_v4 = vunpack.c.l.s4 %v533_v3  ;;  %s259_s15 = scalar_lea.sflag [#allocation3], %s212_s7 }
  0x16   : > { %s385_s27 = sshll.u32 %s217_s26, 2  ;;  %s392_s8 = sshll.u32 %s217_s26, 3 }
  0x17   : > { %s228_s30 = scalar_lea.vmem %s658_s1, %s385_s27  ;;  %s232_s6 = scalar_lea.vmem %s659_s2, %s385_s27  ;;  %v242_v6 = vunpack.c.0.s8 %v241_v4 }
  0x18   : > { %v235_v1 = vld [vmem:[%s228_s30] sm:$0xf]  ;;  %s223_s19 = scalar_lea.vmem %s657_s0, %s392_s8  ;;  %s214_s27 = scalar_lea.vmem [#allocation2], %s382_s9 }
  0x19   : > { %238 = vperm.xlu0 %451, %v235_v1   ;;  %v246_v2 = vld [vmem:[%s232_s6] sm:$0xf]  ;;  %s274_s29 = sshll.u32 %s214_s27, 4  ;;  %s276_s30 = sshll.u32 %s272_s28, 4  ;;  %s275_s29 = int_to_ptr.vmem [resolvable:$true] %s274_s29  ;;  %s277_s30 = int_to_ptr.hbm [resolvable:$true] %s276_s30 }
  0x1a   : > { %v234_v8 = vld [vmem:[%s223_s19] sm:$0xff]  ;;  %s466_s26 = sshra.s32 %s277_s30, 4  ;;  %s472_s8 = scalar_lea.hbm %s660_s3, 16  ;;  %s467_s26 = int_to_ptr.hbm [resolvable:$true] %s466_s26 }
  0x1b   : > { %s468_s4 = scalar_lea.hbm %s467_s26, 8  ;;  %p473_p1 = scmp.lt.s32.totalorder %s467_s26, %s660_s3 }
  0x1c   : > { %p469_p12 = scmp.ne.s32.totalorder %s467_s26, %s468_s4  ;;  %p474_p2 = scmp.lt.s32.totalorder %s472_s8, %s468_s4 }
  0x1e   : > { %p470_p13 = pnand %p469_p12, %p594_p4  ;;  %p475_p3 = por %p474_p2, %p473_p1 }
  0x20   : > { %p471_p0 = pneg %p470_p13 }
  0x21   : > { %249 = vperm.xlu0 %451, %v246_v2  }
  0x22   : > { %p476_p5 = pnand %p475_p3, %p471_p0 }
  0x8b   : > { %v239_v5 = vpop.permute.xlu0 %238 }
  0x8c   : > { %v243_v7 = vperm.slane %v239_v5, %v242_v6 }
  0x8e   : > { %v245_v10 = vmul.f32 %v243_v7, %v234_v8 }
  0x93   : > { %v250_v9 = vpop.permute.xlu0 %249 }
  0x94   : > { %v254_v11 = vperm.slane %v250_v9, %v242_v6 }
  0x96   : > { %v256_v12 = vadd.f32 %v254_v11, %v245_v10 }
  0x98   : > { %257 = vst [vmem:[%s214_s27] sm:$0xff] %v256_v12 }
  0x99   : > { %479 = shalt.err (!%p476_p5)
}
  0x9a   : > { %394 = dma.vmem_to_hbm [thread:$0]  (%p594_p4), %s275_s29, 128, %s277_s30, %s259_s15  }
  0x9b PF: > { %p400_p6 = scmp.ge.s32.totalorder %s530_s17, 2  ;;  %s288_s7 = sand.u32 1, %s510_s12  }
  0x9c   : > { %s289_s11 = scalar_lea.sflag [#allocation3], %s288_s7 }
  0x9d   : > { %p397_p7 = pnand %p400_p6, %p601_p8 }
  0x9f   : > { %p398_p9 = pneg %p397_p7 }
  0xa1   : > { %505 = dma.done.wait (%p398_p9), %s289_s11, 128  }
  0xa2   : > { %507 = vsyncadd (%p398_p9), %s289_s11, 4294967168  ;;  %s16_s17 = sadd.s32 1, %s530_s17   ;;  %s663_s12 = smov %s514_s13 }
  0xa3   : > { %p13_p10 = scmp.ge.s32.totalorder %s16_s17, 4   ;;  %s664_s13 = smov %s518_s14 }
  0xa4   : > { %s665_s14 = smov %s607_s25  ;;  %s666_s15 = smov %s526_s16 }
  0xa5   : > { %s667_s16 = smov %s669_s20  ;;  %15 = sbr.rel (!%p13_p10) target bundleno = 4 (0x4), region = 73 }
  0xaa   :  { %295 = vsyncpa [#allocation3], 1 }
  0xab   :  { %297 = vsyncpa [#allocation3 + $0x1], 1 }

</bundles_post_ra>
